<compile_context>
chip_gen: v6e
topology: v6e:2x2x1
jax: 0.10.0
libtpu: 0.0.40
codegen_flags: <defaults>
</compile_context>

<pallas_src>
import jax
import jax.numpy as jnp
from jax.experimental import pallas as pl
from jax.experimental.pallas import tpu as pltpu


def _round_up(x: int, m: int) -> int:
    return ((x + m - 1) // m) * m


# ---------------------------------------------------------------------------
# Pallas kernel: tiled out = x @ proj, f32 accumulation in VMEM scratch.
# Grid = (B_tiles, K_tiles, L_tiles); contraction axis (L) is innermost/arbitrary.
# ---------------------------------------------------------------------------
def _lsh_matmul_kernel(x_ref, p_ref, o_ref, acc_ref):
    @pl.when(pl.program_id(2) == 0)
    def _():
        acc_ref[...] = jnp.zeros_like(acc_ref)

    acc_ref[...] += jnp.dot(
        x_ref[...], p_ref[...], preferred_element_type=jnp.float32
    )

    @pl.when(pl.program_id(2) == pl.num_programs(2) - 1)
    def _():
        o_ref[...] = acc_ref[...].astype(o_ref.dtype)


@jax.jit
def lsh_forward(x, proj):
    """x: (B, L) f32, proj: (L, K) f32  ->  (B, K) f32."""
    B, L = x.shape
    Lp_, K = proj.shape
    assert L == Lp_

    # Tile sizes: large, (sublane, lane)-aligned, well under v7x's 64 MiB VMEM.
    # bf16 inputs -> keep the x row tile a multiple of 16 (sublane packing).
    tm = min(512, _round_up(B, 16))
    tk = min(512, _round_up(L, 128))
    tn = min(256, _round_up(K, 128))

    Bp = _round_up(B, tm)
    Lpad = _round_up(L, tk)
    Kp = _round_up(K, tn)     # lane-dense output: K padded to >= 128

    # Zero padding is exact: padded x columns multiply zero proj rows, padded
    # proj columns produce output columns that are sliced away below.
    xp = jnp.pad(x, ((0, Bp - B), (0, Lpad - L))).astype(jnp.bfloat16)
    pp = jnp.pad(proj, ((0, Lpad - L), (0, Kp - K))).astype(jnp.bfloat16)

    grid = (Bp // tm, Kp // tn, Lpad // tk)

    cost = pl.CostEstimate(
        flops=2 * Bp * Lpad * Kp,
        transcendentals=0,
        bytes_accessed=(Bp * Lpad + Lpad * Kp) * 2 + Bp * Kp * 4,
    )

    out_padded = pl.pallas_call(
        _lsh_matmul_kernel,
        out_shape=jax.ShapeDtypeStruct((Bp, Kp), jnp.float32),
        grid_spec=pltpu.PrefetchScalarGridSpec(
            num_scalar_prefetch=0,
            grid=grid,
            in_specs=[
                pl.BlockSpec((tm, tk), lambda i, j, k: (i, k)),
                pl.BlockSpec((tk, tn), lambda i, j, k: (k, j)),
            ],
            out_specs=pl.BlockSpec((tm, tn), lambda i, j, k: (i, j)),
            scratch_shapes=[pltpu.VMEM((tm, tn), jnp.float32)],
        ),
        compiler_params=pltpu.CompilerParams(
            dimension_semantics=("parallel", "parallel", "arbitrary"),
            vmem_limit_bytes=32 * 1024 * 1024,
        ),
        cost_estimate=cost,
    )(xp, pp)

    return out_padded[:B, :K]


# ---------------------------------------------------------------------------
# Parameter construction (vectorized: vmapped permutations + single scatter)
# ---------------------------------------------------------------------------
def make_lsh_params(key, *, input_length, num_components, sample_size, scale=1.0,
                    dist="unif"):
    """Returns (weights (K, S), sample_indexes (K, S) int32, proj (L, K) f32)."""
    k_w, k_idx = jax.random.split(key)
    if dist == "normal":
        weights = jax.random.normal(k_w, (num_components, sample_size)) * scale
    else:  # 'unif' -> U(-scale, scale), matching torch.rand * 2*scale - scale
        weights = (
            jax.random.uniform(k_w, (num_components, sample_size)) * (2.0 * scale)
            - scale
        )
    weights = weights.astype(jnp.float32)

    # Per-component choice without replacement == first S entries of a permutation.
    idx_keys = jax.random.split(k_idx, num_components)
    sample_indexes = jax.vmap(
        lambda k: jax.random.permutation(k, input_length)[:sample_size]
    )(idx_keys).astype(jnp.int32)

    # Dense projection P (L, K): P[idx[k, j], k] = W[k, j] via a single scatter.
    rows = sample_indexes.reshape(-1)
    cols = jnp.repeat(jnp.arange(num_components, dtype=jnp.int32), sample_size)
    proj = (
        jnp.zeros((input_length, num_components), dtype=jnp.float32)
        .at[rows, cols]
        .set(weights.reshape(-1))
    )
    return weights, sample_indexes, proj


def lsh_reference(x, weights, sample_indexes):
    """Pure-JAX f32 reference mirroring the PyTorch loop exactly."""
    outs = []
    for k in range(weights.shape[0]):
        i = x[:, sample_indexes[k]]
        outs.append(i @ weights[k, :])
    return jnp.stack(outs, axis=1)


# ---------------------------------------------------------------------------
if __name__ == "__main__":
    # Small shapes consistent with the module's forward: x is (batch, input_length).
    batch = 8
    input_length = 32
    num_components = 4
    sample_size = input_length // 2  # module default
    scale = 1.0

    key = jax.random.PRNGKey(0)
    k_x, k_p = jax.random.split(key)

    x = jax.random.normal(k_x, (batch, input_length), dtype=jnp.float32)
    weights, sample_indexes, proj = make_lsh_params(
        k_p,
        input_length=input_length,
        num_components=num_components,
        sample_size=sample_size,
        scale=scale,
        dist="unif",
    )

    out = lsh_forward(x, proj)
    out = jax.block_until_ready(out)

    ref = lsh_reference(x, weights, sample_indexes)
    assert out.shape == (batch, num_components)
    assert out.dtype == jnp.float32
    # bf16 inputs inside the kernel -> looser tolerance than pure-f32 path.
    assert jnp.allclose(out, ref, atol=5e-2, rtol=5e-2), (
        jnp.max(jnp.abs(out - ref))
    )

    print("KERNEL_OK")
</pallas_src>

<mosaic_0001>
module attributes {stable_mosaic.version = 11 : i64} {
  func.func @_lsh_matmul_kernel(%arg0: i32, %arg1: i32, %arg2: i32, %arg3: memref<16x128xbf16, #tpu.memory_space<vmem>>, %arg4: memref<128x128xbf16, #tpu.memory_space<vmem>>, %arg5: memref<16x128xf32, #tpu.memory_space<vmem>>, %arg6: memref<16x128xf32, #tpu.memory_space<vmem>>) attributes {dimension_semantics = [#tpu.dimension_semantics<parallel>, #tpu.dimension_semantics<parallel>, #tpu.dimension_semantics<arbitrary>], iteration_bounds = array<i64: 1, 1, 1>, scalar_prefetch = 0 : i64, scratch_operands = 1 : i64, tpu.core_type = #tpu.core_type<tc>, window_params = [{transform_indices = @transform_0, window_bounds = array<i64: 16, 128>}, {transform_indices = @transform_1, window_bounds = array<i64: 128, 128>}, {transform_indices = @transform_2, window_bounds = array<i64: 16, 128>}]} {
    %c0_i32 = arith.constant 0 : i32
    %0 = arith.cmpi eq, %arg2, %c0_i32 : i32
    %1 = arith.extui %0 : i1 to i32
    %c0_i32_0 = arith.constant 0 : i32
    %2 = arith.cmpi ne, %1, %c0_i32_0 : i32
    scf.if %2 {
      %cst_10 = arith.constant 0.000000e+00 : f32
      %12 = vector.broadcast %cst_10 : f32 to vector<16x128xf32>
      %c0_11 = arith.constant 0 : index
      %c0_12 = arith.constant 0 : index
      %13 = vector.load %arg6[%c0_11, %c0_12] : memref<16x128xf32, #tpu.memory_space<vmem>>, vector<16x128xf32>
      tpu.vector_store %arg6[%c0_11, %c0_12], %12 {strides = array<i32>} : memref<16x128xf32, #tpu.memory_space<vmem>>, vector<16x128xf32>,
    } else {
    }
    %c0 = arith.constant 0 : index
    %c0_1 = arith.constant 0 : index
    %3 = vector.load %arg6[%c0, %c0_1] : memref<16x128xf32, #tpu.memory_space<vmem>>, vector<16x128xf32>
    %c0_2 = arith.constant 0 : index
    %c0_3 = arith.constant 0 : index
    %4 = vector.load %arg3[%c0_2, %c0_3] : memref<16x128xbf16, #tpu.memory_space<vmem>>, vector<16x128xbf16>
    %c0_4 = arith.constant 0 : index
    %c0_5 = arith.constant 0 : index
    %5 = vector.load %arg4[%c0_4, %c0_5] : memref<128x128xbf16, #tpu.memory_space<vmem>>, vector<128x128xbf16>
    %cst = arith.constant dense<0.000000e+00> : vector<16x128xf32>
    %6 = tpu.matmul %4, %5, %cst {dimension_numbers = #tpu.dot_dimension_numbers<[1], [0], [0], [1], [0, 0, 1, 1], [], []>} : vector<16x128xbf16>, vector<128x128xbf16>, vector<16x128xf32> -> vector<16x128xf32>
    %7 = arith.addf %3, %6 : vector<16x128xf32>
    %c0_6 = arith.constant 0 : index
    %c0_7 = arith.constant 0 : index
    %8 = vector.load %arg6[%c0_6, %c0_7] : memref<16x128xf32, #tpu.memory_space<vmem>>, vector<16x128xf32>
    tpu.vector_store %arg6[%c0_6, %c0_7], %7 {strides = array<i32>} : memref<16x128xf32, #tpu.memory_space<vmem>>, vector<16x128xf32>,
    %c0_i32_8 = arith.constant 0 : i32
    %9 = arith.cmpi eq, %arg2, %c0_i32_8 : i32
    %10 = arith.extui %9 : i1 to i32
    %c0_i32_9 = arith.constant 0 : i32
    %11 = arith.cmpi ne, %10, %c0_i32_9 : i32
    scf.if %11 {
      %c0_10 = arith.constant 0 : index
      %c0_11 = arith.constant 0 : index
      %12 = vector.load %arg6[%c0_10, %c0_11] : memref<16x128xf32, #tpu.memory_space<vmem>>, vector<16x128xf32>
      %c0_12 = arith.constant 0 : index
      %c0_13 = arith.constant 0 : index
      %13 = vector.load %arg5[%c0_12, %c0_13] : memref<16x128xf32, #tpu.memory_space<vmem>>, vector<16x128xf32>
      tpu.vector_store %arg5[%c0_12, %c0_13], %12 {strides = array<i32>} : memref<16x128xf32, #tpu.memory_space<vmem>>, vector<16x128xf32>,
    } else {
    }
    return
  }
  func.func @transform_0(%arg0: i32, %arg1: i32, %arg2: i32) -> (i32, i32) {
    %c0_i32 = arith.constant 0 : i32
    return %arg0, %arg2 : i32, i32
  }
  func.func @transform_1(%arg0: i32, %arg1: i32, %arg2: i32) -> (i32, i32) {
    %c0_i32 = arith.constant 0 : i32
    return %arg2, %arg1 : i32, i32
  }
  func.func @transform_2(%arg0: i32, %arg1: i32, %arg2: i32) -> (i32, i32) {
    %c0_i32 = arith.constant 0 : i32
    return %arg0, %arg1 : i32, i32
  }
}

</mosaic_0001>

<bundles_post_ra>
// kernel: lsh_forward.1
= control target key start
LH: loop header
LB: loop body
LE: loop exit
PB: predicated region body
PF: predicated region fallthrough
CT: control target
= control target key end

     0   :  { %v197_v0 = vmov 0.0   ;;  %vm198_vm0 = vmmov 0   ;;  %s247_s1 = inlined_call_operand.vmem [shape: bf16[128,128], index: 1, kind: input, shape index: {}]   ;;  %s248_s0 = inlined_call_operand.vmem [shape: bf16[16,128], index: 0, kind: input, shape index: {}]   ;;  %s249_s2 = inlined_call_operand.vmem [shape: f32[16,128], index: 2, kind: output, shape index: {}]  }
   0x1   :  { %166 = vmatprep.subr.bf16.mxu0 %v197_v0  ;;  %v188_v1 = vld [vmem:[%s247_s1 + $0x38] sm:$0xff]   ;;  %182 = vmatprep.mubr.msk.bf16.mxu0 %vm198_vm0, %v197_v0  ;;  %v189_v2 = vld [vmem:[%s247_s1 + $0x30] sm:$0xff]   ;;  %v190_v3 = vld [vmem:[%s247_s1 + $0x28] sm:$0xff]  }
   0x2   :  { %167 = vmatpush3.bf16.msra.mxu0 %v188_v1  ;;  %v191_v4 = vld [vmem:[%s247_s1 + $0x20] sm:$0xff]   ;;  %v192_v5 = vld [vmem:[%s247_s1 + $0x18] sm:$0xff]   ;;  %v193_v6 = vld [vmem:[%s247_s1 + $0x10] sm:$0xff]  }
   0x3   :  { %168 = vmatprep.subr.bf16.mxu0 %v197_v0  ;;  %v194_v7 = vld [vmem:[%s247_s1 + $0x8] sm:$0xff]   ;;  %v195_v8 = vld [vmem:[%s247_s1] sm:$0xff]  }
   0x4   :  { %v196_v9 = vld [vmem:[%s248_s0] sm:$0xff]  }
   0x6   :  { %169 = vmatpush3.bf16.msra.mxu0 %v189_v2 }
   0x7   :  { %170 = vmatprep.subr.bf16.mxu0 %v197_v0 }
   0xa   :  { %171 = vmatpush3.bf16.msra.mxu0 %v190_v3 }
   0xb   :  { %172 = vmatprep.subr.bf16.mxu0 %v197_v0 }
   0xe   :  { %173 = vmatpush3.bf16.msra.mxu0 %v191_v4 }
   0xf   :  { %174 = vmatprep.subr.bf16.mxu0 %v197_v0 }
  0x12   :  { %175 = vmatpush3.bf16.msra.mxu0 %v192_v5 }
  0x13   :  { %176 = vmatprep.subr.bf16.mxu0 %v197_v0 }
  0x16   :  { %177 = vmatpush3.bf16.msra.mxu0 %v193_v6 }
  0x17   :  { %178 = vmatprep.subr.bf16.mxu0 %v197_v0 }
  0x1a   :  { %179 = vmatpush3.bf16.msra.mxu0 %v194_v7 }
  0x1b   :  { %180 = vmatprep.subr.bf16.mxu0 %v197_v0 }
  0x1e   :  { %181 = vmatpush3.bf16.msra.mxu0 %v195_v8 }
  0x21   :  { %183 = vmatmul.mubr.bf16.vlgmr.msra.gmra.mxu0 %v196_v9 }
  0xe1   :  { %v126_v10 = vpop.f32.mrf.mxu0 }
  0xe2   :  { %142 = vst [vmem:[%s249_s2] sm:$0xff] %v126_v10 }
  0xe3   :  { %v184_v11 = vpop.f32.mrf.mxu0 }
  0xe5   :  { %v129_v12 = vpop.f32.mrf.mxu0 }
  0xe6   :  { %143 = vst [vmem:[%s249_s2 + $0x8] sm:$0xff] %v129_v12 }
  0xe7   :  { %v185_v13 = vpop.f32.mrf.mxu0 }

</bundles_post_ra>
